<compile_context>
chip_gen: v7x
topology: tpu7x:2x2x1
jax: 0.10.0
libtpu: 0.0.40
codegen_flags: <defaults>
</compile_context>

<pallas_src>
import functools
import math

import jax
import jax.numpy as jnp
from jax.experimental import pallas as pl
from jax.experimental.pallas import tpu as pltpu

_LANES = 128
_SUBLANES = 8
_ROW_ALIGN = 32            # block row multiple valid for f32/bf16/int8/bool tiling
_N_SPLIT = 2               # leading "parallel" grid axis (v7x: one slab per TC)
_MXU_FOLD_MIN_ROWS = 256   # below this the matmul fold is not worth spinning up


def _round_up(v, m):
    return (v + m - 1) // m * m


def _choose_cols(total: int) -> int:
    """Pick the lane dimension of the zero-copy 2-D view of the flat tensor."""
    if total % _LANES == 0:
        return _LANES
    best_d, best_score = 1, -1.0
    for d in range(1, min(total, 2048) + 1):
        if total % d:
            continue
        rows = total // d
        lane_density = d / _round_up(d, _LANES)
        sublane_density = min(rows, _SUBLANES) / _SUBLANES
        score = lane_density * sublane_density
        if score > best_score:
            best_d, best_score = d, score
    return best_d


def _budgets_for_device():
    """(combined per-step streaming bytes for both inputs, scoped VMEM limit)."""
    try:
        kind = jax.devices()[0].device_kind.lower()
    except Exception:  # pragma: no cover - defensive, falls back to safe budget
        kind = ""
    if "v7" in kind:
        return 6 * 2**20, 48 * 2**20      # 64 MiB VMEM/TC -> keep headroom
    if "v6" in kind:
        return 8 * 2**20, 64 * 2**20      # amortize ~0.35us/step at 1.35 TB/s
    return 4 * 2**20, 32 * 2**20          # v5e / unknown: conservative, proven


def _partial_sums_kernel(x_ref, t_ref, acc_ref, *, rows, steps_per_core, needs_mask):
    """Accumulates three partial-sum planes per core: (BCE, p*tgt, p+tgt)."""
    block_r, cols = x_ref.shape
    c = pl.program_id(0)            # TensorCore-split index ("parallel")
    i = pl.program_id(1)            # streaming step within this core ("arbitrary")

    @pl.when(i == 0)
    def _init():
        acc_ref[...] = jnp.zeros_like(acc_ref)

    x = x_ref[...].astype(jnp.float32)

    # Fold targets from their native dtype (review: skip cast/compare when possible).
    t_raw = t_ref[...]
    t_dtype = jnp.dtype(t_ref.dtype)
    if t_dtype == jnp.bool_:
        tb = t_raw.astype(jnp.float32)          # (targets > 0).float() == targets
        xt = x * tb
    elif jnp.issubdtype(t_dtype, jnp.integer):
        tb = (t_raw > 0).astype(jnp.float32)
        xt = x * t_raw.astype(jnp.float32)
    else:
        tf = t_raw.astype(jnp.float32)
        tb = (tf > 0.0).astype(jnp.float32)
        xt = x * tf

    # One EUP tanh replaces exp + divide + large-|x| guard:
    #   sigmoid(x) = 0.5 + 0.5*tanh(x/2),   softplus(-|x|) = -log(sigmoid(|x|)).
    th = jnp.tanh(x * 0.5)
    p = 0.5 + 0.5 * th                          # sigmoid(x)
    q = 0.5 + 0.5 * jnp.abs(th)                 # sigmoid(|x|) in [0.5, 1]
    bce = jnp.maximum(x, 0.0) - xt - jnp.log(q)  # stable BCE-with-logits
    inter = p * tb                               # prediction * target
    union = p + tb                               # prediction + target

    if block_r >= _MXU_FOLD_MIN_ROWS:
        # Column sums on the MXU (idle otherwise): all 8 output rows carry the
        # same sums, the wrapper reads row 0 only.  HIGHEST keeps ~f32 accuracy.
        ones = jnp.ones((_SUBLANES, block_r), jnp.float32)

        def fold(v):
            return jnp.dot(ones, v, precision=jax.lax.Precision.HIGHEST,
                           preferred_element_type=jnp.float32)
    else:
        # Tiny single-block problems: plain VALU/XLU fold.
        def fold(v):
            return jnp.broadcast_to(jnp.sum(v, axis=0, keepdims=True),
                                    (_SUBLANES, cols))

    def accumulate(b, pt, pu):
        acc_ref[0, 0] += fold(b)
        acc_ref[0, 1] += fold(pt)
        acc_ref[0, 2] += fold(pu)

    if not needs_mask:
        accumulate(bce, inter, union)
    else:
        # Rows still to process at this block's start (row units -> no 2^31
        # element-index overflow); <= 0 for the clamped duplicate block the
        # short core re-reads when the real block count is odd.
        rem_rows = rows - (c * steps_per_core + i) * block_r

        @pl.when(rem_rows >= block_r)           # interior block: no mask work
        def _fast():
            accumulate(bce, inter, union)

        @pl.when(rem_rows < block_r)            # ragged tail / duplicate block
        def _tail():
            row = jax.lax.broadcasted_iota(jnp.int32, (block_r, cols), 0)
            valid = row < rem_rows              # select also kills garbage rows
            zero = jnp.zeros_like(bce)
            accumulate(jnp.where(valid, bce, zero),
                       jnp.where(valid, inter, zero),
                       jnp.where(valid, union, zero))


def loss_binary_dice(outputs, targets, dice_weight=1.0):
    """Pallas implementation of LossBinaryDice.forward (scalar f32 result)."""
    assert outputs.shape == targets.shape
    total = math.prod(outputs.shape)
    assert total > 0

    # Zero-copy row-major 2-D view (no concatenate / pad copy, even when ragged).
    cols = _choose_cols(total)
    rows = total // cols
    x2 = outputs.reshape(rows, cols)
    t2 = targets.reshape(rows, cols)

    # Block rows from a byte budget so low-precision inputs stream bigger tiles.
    tile_budget, vmem_limit = _budgets_for_device()
    cols_padded = _round_up(cols, _LANES)
    row_bytes = cols_padded * (jnp.dtype(outputs.dtype).itemsize
                               + jnp.dtype(targets.dtype).itemsize)
    budget_rows = max(_ROW_ALIGN, tile_budget // row_bytes)
    if budget_rows >= rows:
        block_r = rows                                   # single block along rows
    else:
        block_r = (budget_rows // _ROW_ALIGN) * _ROW_ALIGN

    nb = pl.cdiv(rows, block_r)                          # real blocks
    n_split = _N_SPLIT if nb >= _N_SPLIT else 1          # per-TensorCore split
    steps_per_core = pl.cdiv(nb, n_split)
    needs_mask = n_split * steps_per_core * block_r != rows

    if n_split * steps_per_core == nb:
        in_map = lambda c, i: (c * steps_per_core + i, 0)
    else:  # odd block count: the short core re-reads (and masks) the last block
        in_map = lambda c, i: (jnp.minimum(c * steps_per_core + i, nb - 1), 0)

    kernel = functools.partial(
        _partial_sums_kernel,
        rows=rows, steps_per_core=steps_per_core, needs_mask=needs_mask,
    )

    partials = pl.pallas_call(
        kernel,
        out_shape=jax.ShapeDtypeStruct((n_split, 3, _SUBLANES, cols), jnp.float32),
        grid_spec=pltpu.PrefetchScalarGridSpec(
            num_scalar_prefetch=0,
            grid=(n_split, steps_per_core),
            in_specs=[
                pl.BlockSpec((block_r, cols), in_map),
                pl.BlockSpec((block_r, cols), in_map),
            ],
            out_specs=pl.BlockSpec((1, 3, _SUBLANES, cols),
                                   lambda c, i: (c, 0, 0, 0)),
        ),
        compiler_params=pltpu.CompilerParams(
            dimension_semantics=("parallel", "arbitrary"),
            vmem_limit_bytes=vmem_limit,
        ),
    )(x2, t2)

    # Tiny final cross-lane reduction + loss formula, once, outside the kernel.
    # Row 0 only: the 8 accumulator rows are identical copies of the sums.
    sums = jnp.sum(partials[:, :, 0, :], axis=(0, 2))    # [sum bce, sum p*t, sum p+t]
    loss = sums[0] / total                               # BCEWithLogits, mean
    if dice_weight:
        smooth = 1e-15
        dice_part = 1.0 - (2.0 * sums[1] + smooth) / (sums[2] + smooth)
        loss = loss + dice_weight * dice_part
    return loss


def _reference_loss(outputs, targets, dice_weight=1.0):
    x = outputs.astype(jnp.float32)
    t = targets.astype(jnp.float32)
    bce = jnp.mean(jnp.maximum(x, 0.0) - x * t + jnp.log1p(jnp.exp(-jnp.abs(x))))
    p = jax.nn.sigmoid(x)
    tb = (t > 0.0).astype(jnp.float32)
    smooth = 1e-15
    dice = 1.0 - (2.0 * jnp.sum(p * tb) + smooth) / (jnp.sum(p) + jnp.sum(tb) + smooth)
    return bce + dice_weight * dice


if __name__ == "__main__":
    key = jax.random.PRNGKey(0)
    k1, k2 = jax.random.split(key)

    # Small NCHW shapes consistent with a segmentation head: [N, C, H, W]
    shape = (2, 4, 16, 16)
    outputs = jax.random.normal(k1, shape, dtype=jnp.float32) * 3.0   # logits
    targets = (jax.random.uniform(k2, shape) > 0.5).astype(jnp.float32)

    loss = jax.block_until_ready(loss_binary_dice(outputs, targets, dice_weight=1.0))
    ref = _reference_loss(outputs, targets, dice_weight=1.0)
    assert jnp.allclose(loss, ref, rtol=1e-5, atol=2e-5), (loss, ref)

    # Ragged size: exercises the zero-copy divisor-based 2-D view (no padding).
    shape2 = (2, 3, 15, 17)
    o2 = jax.random.normal(k1, shape2, dtype=jnp.float32) * 3.0
    t2 = (jax.random.uniform(k2, shape2) > 0.5).astype(jnp.float32)
    loss2 = jax.block_until_ready(loss_binary_dice(o2, t2, dice_weight=1.0))
    ref2 = _reference_loss(o2, t2, dice_weight=1.0)
    assert jnp.allclose(loss2, ref2, rtol=1e-5, atol=2e-5), (loss2, ref2)

    # Bool targets: exercises the native-dtype target path.
    t3 = jax.random.uniform(k1, shape) > 0.5
    loss3 = jax.block_until_ready(loss_binary_dice(outputs, t3, dice_weight=1.0))
    ref3 = _reference_loss(outputs, t3, dice_weight=1.0)
    assert jnp.allclose(loss3, ref3, rtol=1e-5, atol=2e-5), (loss3, ref3)

    print("KERNEL_OK")
</pallas_src>

<mosaic_0001>
module attributes {stable_mosaic.version = 11 : i64} {
  func.func @_partial_sums_kernel(%arg0: i32, %arg1: i32, %arg2: memref<16x128xf32, #tpu.memory_space<vmem>>, %arg3: memref<16x128xf32, #tpu.memory_space<vmem>>, %arg4: memref<1x3x8x128xf32, #tpu.memory_space<vmem>>) attributes {dimension_semantics = [#tpu.dimension_semantics<parallel>, #tpu.dimension_semantics<arbitrary>], iteration_bounds = array<i64: 1, 1>, scalar_prefetch = 0 : i64, scratch_operands = 0 : i64, tpu.core_type = #tpu.core_type<tc>, window_params = [{transform_indices = @transform_0, window_bounds = array<i64: 16, 128>}, {transform_indices = @transform_1, window_bounds = array<i64: 16, 128>}, {transform_indices = @transform_2, window_bounds = array<i64: 1, 3, 8, 128>}]} {
    %c0_i32 = arith.constant 0 : i32
    %0 = arith.cmpi eq, %arg1, %c0_i32 : i32
    %1 = arith.extui %0 : i1 to i32
    %c0_i32_0 = arith.constant 0 : i32
    %2 = arith.cmpi ne, %1, %c0_i32_0 : i32
    scf.if %2 {
      %cst_35 = arith.constant 0.000000e+00 : f32
      %59 = vector.broadcast %cst_35 : f32 to vector<1x3x8x128xf32>
      %c0_36 = arith.constant 0 : index
      %c0_37 = arith.constant 0 : index
      %c0_38 = arith.constant 0 : index
      %c0_39 = arith.constant 0 : index
      %60 = vector.load %arg4[%c0_36, %c0_37, %c0_38, %c0_39] : memref<1x3x8x128xf32, #tpu.memory_space<vmem>>, vector<1x3x8x128xf32>
      tpu.vector_store %arg4[%c0_36, %c0_37, %c0_38, %c0_39], %59 {strides = array<i32>} : memref<1x3x8x128xf32, #tpu.memory_space<vmem>>, vector<1x3x8x128xf32>,
    } else {
    }
    %c0 = arith.constant 0 : index
    %c0_1 = arith.constant 0 : index
    %3 = vector.load %arg2[%c0, %c0_1] : memref<16x128xf32, #tpu.memory_space<vmem>>, vector<16x128xf32>
    %c0_2 = arith.constant 0 : index
    %c0_3 = arith.constant 0 : index
    %4 = vector.load %arg3[%c0_2, %c0_3] : memref<16x128xf32, #tpu.memory_space<vmem>>, vector<16x128xf32>
    %cst = arith.constant 0.000000e+00 : f32
    %5 = vector.broadcast %cst : f32 to vector<16x128xf32>
    %6 = arith.cmpf ogt, %4, %5 : vector<16x128xf32>
    %7 = arith.extui %6 : vector<16x128xi1> to vector<16x128xi32>
    %8 = arith.sitofp %7 : vector<16x128xi32> to vector<16x128xf32>
    %9 = arith.mulf %3, %4 : vector<16x128xf32>
    %cst_4 = arith.constant 5.000000e-01 : f32
    %10 = vector.broadcast %cst_4 : f32 to vector<16x128xf32>
    %11 = arith.mulf %3, %10 : vector<16x128xf32>
    %12 = math.tanh %11 : vector<16x128xf32>
    %cst_5 = arith.constant 5.000000e-01 : f32
    %13 = vector.broadcast %cst_5 : f32 to vector<16x128xf32>
    %14 = arith.mulf %13, %12 : vector<16x128xf32>
    %cst_6 = arith.constant 5.000000e-01 : f32
    %15 = vector.broadcast %cst_6 : f32 to vector<16x128xf32>
    %16 = arith.addf %15, %14 : vector<16x128xf32>
    %17 = math.absf %12 : vector<16x128xf32>
    %cst_7 = arith.constant 5.000000e-01 : f32
    %18 = vector.broadcast %cst_7 : f32 to vector<16x128xf32>
    %19 = arith.mulf %18, %17 : vector<16x128xf32>
    %cst_8 = arith.constant 5.000000e-01 : f32
    %20 = vector.broadcast %cst_8 : f32 to vector<16x128xf32>
    %21 = arith.addf %20, %19 : vector<16x128xf32>
    %cst_9 = arith.constant 0.000000e+00 : f32
    %22 = vector.broadcast %cst_9 : f32 to vector<16x128xf32>
    %23 = arith.maximumf %3, %22 : vector<16x128xf32>
    %24 = arith.subf %23, %9 : vector<16x128xf32>
    %25 = math.log %21 : vector<16x128xf32>
    %26 = arith.subf %24, %25 : vector<16x128xf32>
    %27 = arith.mulf %16, %8 : vector<16x128xf32>
    %28 = arith.addf %16, %8 : vector<16x128xf32>
    %c0_10 = arith.constant 0 : index
    %c0_11 = arith.constant 0 : index
    %c0_12 = arith.constant 0 : index
    %c0_13 = arith.constant 0 : index
    %29 = vector.load %arg4[%c0_10, %c0_11, %c0_12, %c0_13] : memref<1x3x8x128xf32, #tpu.memory_space<vmem>>, vector<1x1x8x128xf32>
    %30 = vector.shape_cast %29 : vector<1x1x8x128xf32> to vector<8x128xf32>
    %cst_14 = arith.constant dense<0.000000e+00> : vector<128xf32>
    %31 = vector.multi_reduction <add>, %26, %cst_14 [0] : vector<16x128xf32> to vector<128xf32>
    %32 = vector.shape_cast %31 : vector<128xf32> to vector<1x128xf32>
    %33 = vector.shape_cast %32 : vector<1x128xf32> to vector<1x128xf32>
    %34 = vector.broadcast %33 : vector<1x128xf32> to vector<8x128xf32>
    %35 = arith.addf %30, %34 : vector<8x128xf32>
    %c0_15 = arith.constant 0 : index
    %c0_16 = arith.constant 0 : index
    %c0_17 = arith.constant 0 : index
    %c0_18 = arith.constant 0 : index
    %36 = vector.load %arg4[%c0_15, %c0_16, %c0_17, %c0_18] : memref<1x3x8x128xf32, #tpu.memory_space<vmem>>, vector<1x1x8x128xf32>
    %37 = vector.shape_cast %36 : vector<1x1x8x128xf32> to vector<8x128xf32>
    %38 = vector.shape_cast %35 : vector<8x128xf32> to vector<1x1x8x128xf32>
    tpu.vector_store %arg4[%c0_15, %c0_16, %c0_17, %c0_18], %38 {strides = array<i32>} : memref<1x3x8x128xf32, #tpu.memory_space<vmem>>, vector<1x1x8x128xf32>,
    %c0_19 = arith.constant 0 : index
    %c1 = arith.constant 1 : index
    %c0_20 = arith.constant 0 : index
    %c0_21 = arith.constant 0 : index
    %39 = vector.load %arg4[%c0_19, %c1, %c0_20, %c0_21] : memref<1x3x8x128xf32, #tpu.memory_space<vmem>>, vector<1x1x8x128xf32>
    %40 = vector.shape_cast %39 : vector<1x1x8x128xf32> to vector<8x128xf32>
    %cst_22 = arith.constant dense<0.000000e+00> : vector<128xf32>
    %41 = vector.multi_reduction <add>, %27, %cst_22 [0] : vector<16x128xf32> to vector<128xf32>
    %42 = vector.shape_cast %41 : vector<128xf32> to vector<1x128xf32>
    %43 = vector.shape_cast %42 : vector<1x128xf32> to vector<1x128xf32>
    %44 = vector.broadcast %43 : vector<1x128xf32> to vector<8x128xf32>
    %45 = arith.addf %40, %44 : vector<8x128xf32>
    %c0_23 = arith.constant 0 : index
    %c1_24 = arith.constant 1 : index
    %c0_25 = arith.constant 0 : index
    %c0_26 = arith.constant 0 : index
    %46 = vector.load %arg4[%c0_23, %c1_24, %c0_25, %c0_26] : memref<1x3x8x128xf32, #tpu.memory_space<vmem>>, vector<1x1x8x128xf32>
    %47 = vector.shape_cast %46 : vector<1x1x8x128xf32> to vector<8x128xf32>
    %48 = vector.shape_cast %45 : vector<8x128xf32> to vector<1x1x8x128xf32>
    tpu.vector_store %arg4[%c0_23, %c1_24, %c0_25, %c0_26], %48 {strides = array<i32>} : memref<1x3x8x128xf32, #tpu.memory_space<vmem>>, vector<1x1x8x128xf32>,
    %c0_27 = arith.constant 0 : index
    %c2 = arith.constant 2 : index
    %c0_28 = arith.constant 0 : index
    %c0_29 = arith.constant 0 : index
    %49 = vector.load %arg4[%c0_27, %c2, %c0_28, %c0_29] : memref<1x3x8x128xf32, #tpu.memory_space<vmem>>, vector<1x1x8x128xf32>
    %50 = vector.shape_cast %49 : vector<1x1x8x128xf32> to vector<8x128xf32>
    %cst_30 = arith.constant dense<0.000000e+00> : vector<128xf32>
    %51 = vector.multi_reduction <add>, %28, %cst_30 [0] : vector<16x128xf32> to vector<128xf32>
    %52 = vector.shape_cast %51 : vector<128xf32> to vector<1x128xf32>
    %53 = vector.shape_cast %52 : vector<1x128xf32> to vector<1x128xf32>
    %54 = vector.broadcast %53 : vector<1x128xf32> to vector<8x128xf32>
    %55 = arith.addf %50, %54 : vector<8x128xf32>
    %c0_31 = arith.constant 0 : index
    %c2_32 = arith.constant 2 : index
    %c0_33 = arith.constant 0 : index
    %c0_34 = arith.constant 0 : index
    %56 = vector.load %arg4[%c0_31, %c2_32, %c0_33, %c0_34] : memref<1x3x8x128xf32, #tpu.memory_space<vmem>>, vector<1x1x8x128xf32>
    %57 = vector.shape_cast %56 : vector<1x1x8x128xf32> to vector<8x128xf32>
    %58 = vector.shape_cast %55 : vector<8x128xf32> to vector<1x1x8x128xf32>
    tpu.vector_store %arg4[%c0_31, %c2_32, %c0_33, %c0_34], %58 {strides = array<i32>} : memref<1x3x8x128xf32, #tpu.memory_space<vmem>>, vector<1x1x8x128xf32>,
    return
  }
  func.func @transform_0(%arg0: i32, %arg1: i32) -> (i32, i32) {
    %c1_i32 = arith.constant 1 : i32
    %0 = arith.muli %arg0, %c1_i32 : i32
    %1 = arith.addi %0, %arg1 : i32
    %c0_i32 = arith.constant 0 : i32
    %c0_i32_0 = arith.constant 0 : i32
    return %1, %c0_i32 : i32, i32
  }
  func.func @transform_1(%arg0: i32, %arg1: i32) -> (i32, i32) {
    %c1_i32 = arith.constant 1 : i32
    %0 = arith.muli %arg0, %c1_i32 : i32
    %1 = arith.addi %0, %arg1 : i32
    %c0_i32 = arith.constant 0 : i32
    %c0_i32_0 = arith.constant 0 : i32
    return %1, %c0_i32 : i32, i32
  }
  func.func @transform_2(%arg0: i32, %arg1: i32) -> (i32, i32, i32, i32) {
    %c0_i32 = arith.constant 0 : i32
    %c0_i32_0 = arith.constant 0 : i32
    %c0_i32_1 = arith.constant 0 : i32
    %c0_i32_2 = arith.constant 0 : i32
    return %arg0, %c0_i32, %c0_i32_0, %c0_i32_1 : i32, i32, i32, i32
  }
}

</mosaic_0001>

<bundles_post_ra>
// kernel: tpu_custom_call.1
= control target key start
LH: loop header
LB: loop body
LE: loop exit
PB: predicated region body
PF: predicated region fallthrough
CT: control target
= control target key end

     0   :  { %7 = vsyncpa [#allocation3], 0  ;;  %s303_s0 = inlined_call_operand.hbm [shape: f32[16,128], index: 0, kind: input, shape index: {}]   ;;  %s304_s1 = inlined_call_operand.hbm [shape: f32[16,128], index: 1, kind: input, shape index: {}]   ;;  %s305_s2 = inlined_call_operand.hbm [shape: f32[1,3,8,128], index: 2, kind: output, shape index: {}]  }
   0x1   :  { %8 = vsyncpa [#allocation6], 0 }
   0x2   :  { %9 = vsyncpa [#allocation4], 0  ;;  %s237_s9 = smov [#allocation2]   ;;  %s165_s13 = scalar_lea.hbm %s303_s0, 256 }
   0x3   :  { %s19_s10 = sshll.u32 %s237_s9, 4  ;;  %p166_p0 = scmp.ne.s32.totalorder %s303_s0, %s165_s13  ;;  %s20_s10 = int_to_ptr.vmem [resolvable:$true] %s19_s10 }
   0x4   :  { %p169_p1 = scmp.lt.u32.totalorder %s165_s13, %s303_s0 }
   0x6   :  { %p171_p2 = pnand %p169_p1, %p166_p0 }
   0x8   :  { %174 = shalt.err (!%p171_p2)
}
   0x9   :  { %s175_s18 = scalar_lea.vmem %s20_s10, 256  ;;  %p180_p4 = scmp.lt.s32.totalorder %s20_s10, %s20_s10 }
   0xa   :  { %p176_p3 = scmp.ne.s32.totalorder %s20_s10, %s175_s18  ;;  %p181_p5 = scmp.lt.s32.totalorder %s175_s18, %s175_s18 }
   0xc   :  { %p182_p6 = por %p181_p5, %p180_p4 }
   0xe   :  { %p183_p7 = pnand %p182_p6, %p176_p3 }
  0x10   :  { %186 = shalt.err (!%p183_p7)
}
  0x11   :  { %s238_s19 = smov 128   ;;  %s239_s20 = smov 8  }
  0x12   :  { %25 = dma.hbm_to_vmem [thread:$0]  %s303_s0, 256, %s20_s10, [#allocation3], %s238_s19, %s238_s19, %s239_s20  }
  0x13   :  { %s240_s23 = smov [#allocation5]   ;;  %s187_s27 = scalar_lea.hbm %s304_s1, 256 }
  0x14   :  { %s35_s24 = sshll.u32 %s240_s23, 4  ;;  %p188_p8 = scmp.ne.s32.totalorder %s304_s1, %s187_s27  ;;  %s36_s24 = int_to_ptr.vmem [resolvable:$true] %s35_s24 }
  0x15   :  { %p191_p9 = scmp.lt.u32.totalorder %s187_s27, %s304_s1 }
  0x17   :  { %p193_p10 = pnand %p191_p9, %p188_p8 }
  0x19   :  { %196 = shalt.err (!%p193_p10)
}
  0x1a   :  { %s197_s4 = scalar_lea.vmem %s36_s24, 256  ;;  %p202_p12 = scmp.lt.s32.totalorder %s36_s24, %s36_s24 }
  0x1b   :  { %p198_p11 = scmp.ne.s32.totalorder %s36_s24, %s197_s4  ;;  %p203_p13 = scmp.lt.s32.totalorder %s197_s4, %s197_s4 }
  0x1d   :  { %p204_p0 = por %p203_p13, %p202_p12 }
  0x1f   :  { %p205_p1 = pnand %p204_p0, %p198_p11 }
  0x21   :  { %208 = shalt.err (!%p205_p1)
}
  0x22   :  { %41 = dma.hbm_to_vmem [thread:$0]  %s304_s1, 256, %s36_s24, [#allocation6], %s238_s19, %s238_s19, %s239_s20  }
  0x23   :  { %231 = dma.done.wait [#allocation3], 256  }
  0x24   :  { %232 = vsyncadd [#allocation3], 4294967040 }
  0x25   :  { %233 = dma.done.wait [#allocation6], 256  }
  0x26   :  { %234 = vsyncadd [#allocation6], 4294967040  ;;  %v59_v0 = vld [vmem:[#allocation2] sm:$0xff]  ;;  %v60_v1 = vld [vmem:[#allocation2 + $0x8] sm:$0xff]  ;;  %v241_v10 = vmov 0.0   ;;  %s242_s1 = smov [#allocation7]  }
  0x27   :  { %v71_v2 = vmul.f32 0.5, %v59_v0  ;;  %v72_v3 = vmul.f32 0.5, %v60_v1  ;;  %v61_v4 = vld [vmem:[#allocation5] sm:$0xff]  ;;  %v62_v5 = vld [vmem:[#allocation5 + $0x8] sm:$0xff]  ;;  %v85_v30 = vmax.f32 %v59_v0, 0.0  ;;  %v86_v34 = vmax.f32 %v60_v1, 0.0 }
  0x28   :  { %vm63_vm0 = vcmp.gt.f32.partialorder %v61_v4, 0.0  ;;  %vm64_vm1 = vcmp.gt.f32.partialorder %v62_v5, 0.0  ;;  %v69_v29 = vmul.f32 %v61_v4, %v59_v0  ;;  %v70_v33 = vmul.f32 %v62_v5, %v60_v1  ;;  %s136_s6 = sshll.u32 %s242_s1, 4  ;;  %s137_s6 = int_to_ptr.vmem [resolvable:$true] %s136_s6 }
  0x29   :  { %157 = vtanh.f32 %v71_v2  ;;  %v149_v11 = vsel %vm63_vm0, 1.0, %v241_v10  ;;  %v150_v14 = vsel %vm64_vm1, 1.0, %v241_v10  ;;  %s209_s7 = scalar_lea.vmem %s137_s6, 384  ;;  %p214_p3 = scmp.lt.s32.totalorder %s137_s6, %s137_s6 }
  0x2a   :  { %159 = vtanh.f32 %v72_v3  ;;  %v87_v37 = vsub.f32 %v85_v30, %v69_v29  ;;  %v88_v41 = vsub.f32 %v86_v34, %v70_v33  ;;  %p210_p2 = scmp.ne.s32.totalorder %s137_s6, %s209_s7  ;;  %p215_p4 = scmp.lt.s32.totalorder %s209_s7, %s209_s7 }
  0x2c   :  { %p216_p5 = por %p215_p4, %p214_p3 }
  0x2e   :  { %p217_p6 = pnand %p216_p5, %p210_p2 }
  0x33   :  { %v158_v6 = vpop.eup %157 }
  0x34   :  { %v160_v7 = vpop.eup %159  ;;  %v75_v8 = vmul.f32 0.5, %v158_v6  ;;  %v79_v9 = vand.u32 2147483647, %v158_v6 }
  0x35   :  { %v76_v12 = vmul.f32 0.5, %v160_v7  ;;  %v80_v13 = vand.u32 2147483647, %v160_v7 }
  0x36   :  { %v77_v15 = vadd.f32 0.5, %v75_v8  ;;  %v81_v16 = vmul.f32 0.5, %v79_v9 }
  0x37   :  { %v78_v17 = vadd.f32 0.5, %v76_v12  ;;  %v82_v18 = vmul.f32 0.5, %v80_v13 }
  0x38   :  { %v95_v19 = vmul.f32 %v149_v11, %v77_v15  ;;  %v97_v20 = vadd.f32 %v149_v11, %v77_v15  ;;  %v83_v21 = vadd.f32 0.5, %v81_v16 }
  0x39   :  { %v96_v22 = vmul.f32 %v150_v14, %v78_v17  ;;  %v98_v23 = vadd.f32 %v150_v14, %v78_v17  ;;  %v84_v24 = vadd.f32 0.5, %v82_v18 }
  0x3a   :  { %161 = vlog2.f32 %v83_v21 }
  0x3b   :  { %163 = vlog2.f32 %v84_v24  ;;  %v111_v25 = vadd.f32 %v96_v22, %v95_v19  ;;  %v122_v26 = vadd.f32 %v98_v23, %v97_v20 }
  0x3d   :  { %v112_v27 = vrot.slane %v111_v25, 4  ;;  %v123_v28 = vrot.slane %v122_v26, 4 }
  0x3f   :  { %v113_v31 = vadd.f32 %v112_v27, %v111_v25  ;;  %v124_v32 = vadd.f32 %v123_v28, %v122_v26 }
  0x41   :  { %v114_v35 = vrot.slane %v113_v31, 2  ;;  %v125_v36 = vrot.slane %v124_v32, 2 }
  0x43   :  { %v115_v38 = vadd.f32 %v114_v35, %v113_v31  ;;  %v126_v39 = vadd.f32 %v125_v36, %v124_v32 }
  0x44   :  { %v162_v40 = vpop.eup %161 }
  0x45   :  { %v164_v42 = vpop.eup %163  ;;  %v90_v43 = vmul.f32 0.6931472, %v162_v40  ;;  %v116_v44 = vrot.slane %v115_v38, 1  ;;  %v127_v45 = vrot.slane %v126_v39, 1 }
  0x46   :  { %v92_v46 = vmul.f32 0.6931472, %v164_v42 }
  0x47   :  { %v93_v47 = vsub.f32 %v87_v37, %v90_v43  ;;  %v117_v48 = vadd.f32 %v116_v44, %v115_v38  ;;  %v128_v49 = vadd.f32 %v127_v45, %v126_v39 }
  0x48   :  { %v94_v50 = vsub.f32 %v88_v41, %v92_v46 }
  0x49   :  { %119 = vst [vmem:[#allocation7 + $0x8] sm:$0xff] %v117_v48  ;;  %130 = vst [vmem:[#allocation7 + $0x10] sm:$0xff] %v128_v49 }
  0x4a   :  { %v100_v51 = vadd.f32 %v94_v50, %v93_v47 }
  0x4c   :  { %v101_v52 = vrot.slane %v100_v51, 4 }
  0x4e   :  { %v102_v53 = vadd.f32 %v101_v52, %v100_v51 }
  0x50   :  { %v103_v54 = vrot.slane %v102_v53, 2 }
  0x52   :  { %v104_v55 = vadd.f32 %v103_v54, %v102_v53 }
  0x54   :  { %v105_v56 = vrot.slane %v104_v55, 1 }
  0x56   :  { %v106_v57 = vadd.f32 %v105_v56, %v104_v55 }
  0x58   :  { %108 = vst [vmem:[#allocation7] sm:$0xff] %v106_v57 }
  0x59   :  { %220 = shalt.err (!%p217_p6)
}
  0x5a   :  { %s221_s10 = scalar_lea.hbm %s305_s2, 384 }
  0x5b   :  { %p222_p7 = scmp.ne.s32.totalorder %s305_s2, %s221_s10  ;;  %p225_p8 = scmp.lt.u32.totalorder %s221_s10, %s305_s2 }
  0x5d   :  { %p227_p9 = pnand %p225_p8, %p222_p7 }
  0x5f   :  { %230 = shalt.err (!%p227_p9)
}
  0x60   :  { %142 = dma.vmem_to_hbm [thread:$0]  %s137_s6, 384, %s305_s2, [#allocation4], %s238_s19, %s238_s19, %s239_s20  }
  0x61   :  { %235 = dma.done.wait [#allocation4], 384  }
  0x62   :  { %236 = vsyncadd [#allocation4], 4294966912 }
  0x63   :  { %146 = vsyncpa [#allocation3], 1 }
  0x64   :  { %147 = vsyncpa [#allocation6], 1 }
  0x65   :  { %148 = vsyncpa [#allocation4], 1 }

</bundles_post_ra>
